<compile_context>
chip_gen: v7x
topology: tpu7x:2x2x1
jax: 0.10.0
libtpu: 0.0.40
codegen_flags: <defaults>
</compile_context>

<pallas_src>
import functools

import jax
import jax.numpy as jnp
from jax.experimental import pallas as pl
from jax.experimental.pallas import tpu as pltpu

_NEG_BIG = jnp.float32(-1e30)  # finite bias for padded vocab columns (no NaN)


def decoder_kernel(z_ref, e_ref, b_ref, t_ref, o_ref,
                   m_sc, l_sc, ts_sc, tt_sc):
    j = pl.program_id(1)

    @pl.when(j == 0)
    def _init():
        m_sc[...] = jnp.full_like(m_sc, -jnp.inf)
        l_sc[...] = jnp.zeros_like(l_sc)
        ts_sc[...] = jnp.zeros_like(ts_sc)
        tt_sc[...] = jnp.zeros_like(tt_sc)

    # scores tile (tB, tV): bf16 x bf16 on the MXU, f32 accumulate, + f32 bias.
    scores = jnp.dot(z_ref[...], e_ref[...],
                     preferred_element_type=jnp.float32) + b_ref[...]
    # targets streamed as bf16; reductions in f32.
    t = t_ref[...].astype(jnp.float32)

    # Online logsumexp update (running max + rescaled running sum), all f32.
    m_prev = m_sc[...]
    m_new = jnp.maximum(m_prev, jnp.max(scores, axis=1, keepdims=True))
    scale = jnp.exp(m_prev - m_new)
    l_sc[...] = scale * l_sc[...] + jnp.sum(jnp.exp(scores - m_new),
                                            axis=1, keepdims=True)
    m_sc[...] = m_new

    # Running sums for  sum t*(s - lse) = sum(t*s) - lse * sum(t).
    ts_sc[...] += jnp.sum(t * scores, axis=1, keepdims=True)
    tt_sc[...] += jnp.sum(t, axis=1, keepdims=True)

    @pl.when(j == pl.num_programs(1) - 1)
    def _finalize():
        lse = m_sc[...] + jnp.log(l_sc[...])      # (tB, 1)
        per_row = ts_sc[...] - lse * tt_sc[...]   # (tB, 1)
        # Lane-dense unmasked store; the wrapper reads lane 0 of each row.
        o_ref[...] = jnp.broadcast_to(per_row, o_ref.shape)


def _round_up(x, m):
    return ((x + m - 1) // m) * m


def _vmem_capacity_bytes():
    """Physical VMEM per core; conservative (v7x-sized) fallback on failure."""
    try:
        info = pltpu.get_tpu_info()
        return int(getattr(info, "vmem_capacity_bytes", 64 << 20))
    except Exception:
        return 64 << 20


def _choose_tiles(B, V):
    """Generation-aware (tB, tV, vmem_limit_bytes)."""
    vmem = _vmem_capacity_bytes()
    small_vmem = vmem <= (64 << 20)          # v7x-class: 64 MiB per TensorCore
    Bp8 = _round_up(B, 8)
    Vp128 = _round_up(V, 128)

    # Tiny problems (the actual WISH shapes, B~16, V~512): one fused tile.
    if Bp8 * Vp128 <= 256 * 2048:
        return Bp8, Vp128, (48 << 20) if small_vmem else (100 << 20)

    if small_vmem:
        # ~3*tB*tV*4 B of in-kernel f32 temporaries must fit alongside the
        # double-buffered bf16 input tiles -> cap at 256x4096 (~17 MiB total).
        cap_tB, cap_tV, vmem_limit = 256, 4096, 48 << 20
    else:
        # 128 MiB parts (v5e / v6e): go bigger to amortize per-step overhead
        # and cut E re-streaming (512x8192 ~ 66 MiB incl. temps).
        cap_tB, cap_tV, vmem_limit = 512, 8192, 100 << 20

    tB = min(cap_tB, Bp8)
    tV = min(cap_tV, Vp128)
    if small_vmem and Bp8 > 8 and _round_up(B, tB) == tB:
        # Keep >= 2 batch blocks so both v7x TensorCores get work.
        tB = max(8, (Bp8 // 2) // 8 * 8)
    return tB, tV, vmem_limit


@functools.partial(jax.jit, static_argnames=("tB", "tV", "vmem_limit"))
def _decoder_forward_impl(Z, E_weight, b, targets, *, tB, tV, vmem_limit):
    B, D = Z.shape
    _, V = E_weight.shape
    f32, bf16 = jnp.float32, jnp.bfloat16

    Bp = _round_up(B, tB)
    Vp = _round_up(V, tV)
    nb, nv = Bp // tB, Vp // tV

    # bf16 streaming inputs; pad only when the shapes are ragged w.r.t. tiles.
    # TODO(synk): in a real training loop, hoist the E bf16 cast out of the
    # per-call path (E is a weight and can be stored in bf16 once).
    Zb = Z.astype(bf16)
    Eb = E_weight.astype(bf16)
    Tb = targets.astype(bf16)
    bb = b.astype(f32).reshape(1, V)
    if Bp != B:
        Zb = jnp.pad(Zb, ((0, Bp - B), (0, 0)))
        Tb = jnp.pad(Tb, ((0, Bp - B), (0, 0)))
    if Vp != V:
        Eb = jnp.pad(Eb, ((0, 0), (0, Vp - V)))
        Tb = jnp.pad(Tb, ((0, 0), (0, Vp - V)))
        # Finite huge-negative bias: exp underflows to 0 and 0 * (-1e30) stays
        # finite, so padded vocab columns vanish from lse and from t*scores.
        bb = jnp.pad(bb, ((0, 0), (0, Vp - V)), constant_values=_NEG_BIG)

    grid_spec = pltpu.PrefetchScalarGridSpec(
        num_scalar_prefetch=0,
        grid=(nb, nv),
        in_specs=[
            pl.BlockSpec((tB, D), lambda i, j: (i, 0)),    # Z       (bf16)
            pl.BlockSpec((D, tV), lambda i, j: (0, j)),    # E       (bf16)
            pl.BlockSpec((1, tV), lambda i, j: (0, j)),    # bias    (f32)
            pl.BlockSpec((tB, tV), lambda i, j: (i, j)),   # targets (bf16)
        ],
        out_specs=pl.BlockSpec((tB, 128), lambda i, j: (i, 0)),
        scratch_shapes=[
            pltpu.VMEM((tB, 1), f32),   # running max m
            pltpu.VMEM((tB, 1), f32),   # running sum l
            pltpu.VMEM((tB, 1), f32),   # running sum targets*scores
            pltpu.VMEM((tB, 1), f32),   # running sum targets
        ],
    )

    cost = pl.CostEstimate(
        flops=2 * Bp * D * Vp + 6 * Bp * Vp,
        transcendentals=Bp * Vp,
        bytes_accessed=(Bp * D * 2             # Z (bf16, single pass)
                        + nb * D * Vp * 2      # E re-streamed per batch block
                        + nb * Vp * 4          # bias re-streamed per batch block
                        + Bp * Vp * 2          # targets (bf16, single pass)
                        + Bp * 128 * 4),       # per-row partial output
    )

    partial_out = pl.pallas_call(
        decoder_kernel,
        out_shape=jax.ShapeDtypeStruct((Bp, 128), f32),
        grid_spec=grid_spec,
        compiler_params=pltpu.CompilerParams(
            dimension_semantics=("parallel", "arbitrary"),
            vmem_limit_bytes=vmem_limit,
        ),
        cost_estimate=cost,
    )(Zb, Eb, bb, Tb)

    # Per-row contributions are broadcast across lanes; padded rows contribute 0.
    return jnp.sum(partial_out[:, 0]) / B


def decoder_forward(Z, E_weight, b, targets, *, tB=None, tV=None):
    """Scalar log-likelihood matching Decoder.forward (bf16-streamed matmul)."""
    B, D = Z.shape
    Dw, V = E_weight.shape
    assert Dw == D and b.shape == (1, V) and targets.shape == (B, V)

    auto_tB, auto_tV, vmem_limit = _choose_tiles(B, V)
    tB = auto_tB if tB is None else tB
    tV = auto_tV if tV is None else tV
    assert tB % 8 == 0 and tV % 128 == 0
    return _decoder_forward_impl(Z, E_weight, b, targets,
                                 tB=tB, tV=tV, vmem_limit=vmem_limit)


if __name__ == "__main__":
    # Small shapes consistent with the module: dim_encoding=32, vocab=512, B=16.
    B, D, V = 16, 32, 512

    key = jax.random.PRNGKey(0)
    kz, ke, kt = jax.random.split(key, 3)

    E_weight = jax.random.normal(ke, (D, V), dtype=jnp.float32)  # nn.Embedding ~N(0,1)
    b = jnp.zeros((1, V), dtype=jnp.float32)
    Z = jax.random.normal(kz, (B, D), dtype=jnp.float32)
    targets = jax.nn.softmax(
        jax.random.normal(kt, (B, V), dtype=jnp.float32), axis=1)

    # Pure-JAX reference with matching streaming precision (bf16 Z/E/targets).
    Zb = Z.astype(jnp.bfloat16).astype(jnp.float32)
    Eb = E_weight.astype(jnp.bfloat16).astype(jnp.float32)
    Tb = targets.astype(jnp.bfloat16).astype(jnp.float32)
    scores_ref = Zb @ Eb + b
    logp_ref = jax.nn.log_softmax(scores_ref, axis=1)
    ll_ref = jnp.mean(jnp.sum(logp_ref * Tb, axis=1))

    # 1) Auto-tiled path: for these shapes this is a single fused (1,1) tile.
    ll_auto = decoder_forward(Z, E_weight, b, targets)
    jax.block_until_ready(ll_auto)
    assert jnp.allclose(ll_auto, ll_ref, atol=2e-3, rtol=2e-3), (ll_auto, ll_ref)

    # 2) Forced multi-tile path (grid = (2, 4)): exercises the online logsumexp
    #    across vocab tiles and the batch-parallel grid axis.
    ll_tiled = decoder_forward(Z, E_weight, b, targets, tB=8, tV=128)
    jax.block_until_ready(ll_tiled)
    assert jnp.allclose(ll_tiled, ll_ref, atol=2e-3, rtol=2e-3), (ll_tiled, ll_ref)

    print("KERNEL_OK")
</pallas_src>

<mosaic_0001>
module attributes {stable_mosaic.version = 11 : i64} {
  func.func @decoder_kernel(%arg0: i32, %arg1: i32, %arg2: memref<16x32xbf16, #tpu.memory_space<vmem>>, %arg3: memref<32x512xbf16, #tpu.memory_space<vmem>>, %arg4: memref<1x512xf32, #tpu.memory_space<vmem>>, %arg5: memref<16x512xbf16, #tpu.memory_space<vmem>>, %arg6: memref<16x128xf32, #tpu.memory_space<vmem>>, %arg7: memref<16x1xf32, #tpu.memory_space<vmem>>, %arg8: memref<16x1xf32, #tpu.memory_space<vmem>>, %arg9: memref<16x1xf32, #tpu.memory_space<vmem>>, %arg10: memref<16x1xf32, #tpu.memory_space<vmem>>) attributes {dimension_semantics = [#tpu.dimension_semantics<parallel>, #tpu.dimension_semantics<arbitrary>], iteration_bounds = array<i64: 1, 1>, scalar_prefetch = 0 : i64, scratch_operands = 4 : i64, tpu.core_type = #tpu.core_type<tc>, window_params = [{transform_indices = @transform_0, window_bounds = array<i64: 16, 32>}, {transform_indices = @transform_1, window_bounds = array<i64: 32, 512>}, {transform_indices = @transform_2, window_bounds = array<i64: 1, 512>}, {transform_indices = @transform_3, window_bounds = array<i64: 16, 512>}, {transform_indices = @transform_4, window_bounds = array<i64: 16, 128>}]} {
    %c0_i32 = arith.constant 0 : i32
    %0 = arith.cmpi eq, %arg1, %c0_i32 : i32
    %1 = arith.extui %0 : i1 to i32
    %c0_i32_0 = arith.constant 0 : i32
    %2 = arith.cmpi ne, %1, %c0_i32_0 : i32
    scf.if %2 {
      %cst_30 = arith.constant 0xFF800000 : f32
      %41 = vector.broadcast %cst_30 : f32 to vector<16x1xf32>
      %c0_31 = arith.constant 0 : index
      %c0_32 = arith.constant 0 : index
      %42 = vector.load %arg7[%c0_31, %c0_32] : memref<16x1xf32, #tpu.memory_space<vmem>>, vector<16x1xf32>
      tpu.vector_store %arg7[%c0_31, %c0_32], %41 {strides = array<i32>} : memref<16x1xf32, #tpu.memory_space<vmem>>, vector<16x1xf32>,
      %cst_33 = arith.constant 0.000000e+00 : f32
      %43 = vector.broadcast %cst_33 : f32 to vector<16x1xf32>
      %c0_34 = arith.constant 0 : index
      %c0_35 = arith.constant 0 : index
      %44 = vector.load %arg8[%c0_34, %c0_35] : memref<16x1xf32, #tpu.memory_space<vmem>>, vector<16x1xf32>
      tpu.vector_store %arg8[%c0_34, %c0_35], %43 {strides = array<i32>} : memref<16x1xf32, #tpu.memory_space<vmem>>, vector<16x1xf32>,
      %cst_36 = arith.constant 0.000000e+00 : f32
      %45 = vector.broadcast %cst_36 : f32 to vector<16x1xf32>
      %c0_37 = arith.constant 0 : index
      %c0_38 = arith.constant 0 : index
      %46 = vector.load %arg9[%c0_37, %c0_38] : memref<16x1xf32, #tpu.memory_space<vmem>>, vector<16x1xf32>
      tpu.vector_store %arg9[%c0_37, %c0_38], %45 {strides = array<i32>} : memref<16x1xf32, #tpu.memory_space<vmem>>, vector<16x1xf32>,
      %cst_39 = arith.constant 0.000000e+00 : f32
      %47 = vector.broadcast %cst_39 : f32 to vector<16x1xf32>
      %c0_40 = arith.constant 0 : index
      %c0_41 = arith.constant 0 : index
      %48 = vector.load %arg10[%c0_40, %c0_41] : memref<16x1xf32, #tpu.memory_space<vmem>>, vector<16x1xf32>
      tpu.vector_store %arg10[%c0_40, %c0_41], %47 {strides = array<i32>} : memref<16x1xf32, #tpu.memory_space<vmem>>, vector<16x1xf32>,
    } else {
    }
    %c0 = arith.constant 0 : index
    %c0_1 = arith.constant 0 : index
    %3 = vector.load %arg2[%c0, %c0_1] : memref<16x32xbf16, #tpu.memory_space<vmem>>, vector<16x32xbf16>
    %c0_2 = arith.constant 0 : index
    %c0_3 = arith.constant 0 : index
    %4 = vector.load %arg3[%c0_2, %c0_3] : memref<32x512xbf16, #tpu.memory_space<vmem>>, vector<32x512xbf16>
    %cst = arith.constant dense<0.000000e+00> : vector<16x512xf32>
    %5 = tpu.matmul %3, %4, %cst {dimension_numbers = #tpu.dot_dimension_numbers<[1], [0], [0], [1], [0, 0, 1, 1], [], []>} : vector<16x32xbf16>, vector<32x512xbf16>, vector<16x512xf32> -> vector<16x512xf32>
    %c0_4 = arith.constant 0 : index
    %c0_5 = arith.constant 0 : index
    %6 = vector.load %arg4[%c0_4, %c0_5] : memref<1x512xf32, #tpu.memory_space<vmem>>, vector<1x512xf32>
    %7 = vector.broadcast %6 : vector<1x512xf32> to vector<16x512xf32>
    %8 = arith.addf %5, %7 : vector<16x512xf32>
    %c0_6 = arith.constant 0 : index
    %c0_7 = arith.constant 0 : index
    %9 = vector.load %arg5[%c0_6, %c0_7] : memref<16x512xbf16, #tpu.memory_space<vmem>>, vector<16x512xbf16>
    %10 = arith.extf %9 : vector<16x512xbf16> to vector<16x512xf32>
    %c0_8 = arith.constant 0 : index
    %c0_9 = arith.constant 0 : index
    %11 = vector.load %arg7[%c0_8, %c0_9] : memref<16x1xf32, #tpu.memory_space<vmem>>, vector<16x1xf32>
    %cst_10 = arith.constant dense<0xFF800000> : vector<16xf32>
    %12 = vector.multi_reduction <maximumf>, %8, %cst_10 [1] : vector<16x512xf32> to vector<16xf32>
    %13 = vector.shape_cast %12 : vector<16xf32> to vector<16x1xf32>
    %14 = arith.maximumf %11, %13 : vector<16x1xf32>
    %15 = arith.subf %11, %14 : vector<16x1xf32>
    %16 = math.exp %15 : vector<16x1xf32>
    %c0_11 = arith.constant 0 : index
    %c0_12 = arith.constant 0 : index
    %17 = vector.load %arg8[%c0_11, %c0_12] : memref<16x1xf32, #tpu.memory_space<vmem>>, vector<16x1xf32>
    %18 = arith.mulf %16, %17 : vector<16x1xf32>
    %19 = vector.broadcast %14 : vector<16x1xf32> to vector<16x512xf32>
    %20 = arith.subf %8, %19 : vector<16x512xf32>
    %21 = math.exp %20 : vector<16x512xf32>
    %cst_13 = arith.constant dense<0.000000e+00> : vector<16xf32>
    %22 = vector.multi_reduction <add>, %21, %cst_13 [1] : vector<16x512xf32> to vector<16xf32>
    %23 = vector.shape_cast %22 : vector<16xf32> to vector<16x1xf32>
    %24 = arith.addf %18, %23 : vector<16x1xf32>
    %c0_14 = arith.constant 0 : index
    %c0_15 = arith.constant 0 : index
    %25 = vector.load %arg8[%c0_14, %c0_15] : memref<16x1xf32, #tpu.memory_space<vmem>>, vector<16x1xf32>
    tpu.vector_store %arg8[%c0_14, %c0_15], %24 {strides = array<i32>} : memref<16x1xf32, #tpu.memory_space<vmem>>, vector<16x1xf32>,
    %c0_16 = arith.constant 0 : index
    %c0_17 = arith.constant 0 : index
    %26 = vector.load %arg7[%c0_16, %c0_17] : memref<16x1xf32, #tpu.memory_space<vmem>>, vector<16x1xf32>
    tpu.vector_store %arg7[%c0_16, %c0_17], %14 {strides = array<i32>} : memref<16x1xf32, #tpu.memory_space<vmem>>, vector<16x1xf32>,
    %c0_18 = arith.constant 0 : index
    %c0_19 = arith.constant 0 : index
    %27 = vector.load %arg9[%c0_18, %c0_19] : memref<16x1xf32, #tpu.memory_space<vmem>>, vector<16x1xf32>
    %28 = arith.mulf %10, %8 : vector<16x512xf32>
    %cst_20 = arith.constant dense<0.000000e+00> : vector<16xf32>
    %29 = vector.multi_reduction <add>, %28, %cst_20 [1] : vector<16x512xf32> to vector<16xf32>
    %30 = vector.shape_cast %29 : vector<16xf32> to vector<16x1xf32>
    %31 = arith.addf %27, %30 : vector<16x1xf32>
    %c0_21 = arith.constant 0 : index
    %c0_22 = arith.constant 0 : index
    %32 = vector.load %arg9[%c0_21, %c0_22] : memref<16x1xf32, #tpu.memory_space<vmem>>, vector<16x1xf32>
    tpu.vector_store %arg9[%c0_21, %c0_22], %31 {strides = array<i32>} : memref<16x1xf32, #tpu.memory_space<vmem>>, vector<16x1xf32>,
    %c0_23 = arith.constant 0 : index
    %c0_24 = arith.constant 0 : index
    %33 = vector.load %arg10[%c0_23, %c0_24] : memref<16x1xf32, #tpu.memory_space<vmem>>, vector<16x1xf32>
    %cst_25 = arith.constant dense<0.000000e+00> : vector<16xf32>
    %34 = vector.multi_reduction <add>, %10, %cst_25 [1] : vector<16x512xf32> to vector<16xf32>
    %35 = vector.shape_cast %34 : vector<16xf32> to vector<16x1xf32>
    %36 = arith.addf %33, %35 : vector<16x1xf32>
    %c0_26 = arith.constant 0 : index
    %c0_27 = arith.constant 0 : index
    %37 = vector.load %arg10[%c0_26, %c0_27] : memref<16x1xf32, #tpu.memory_space<vmem>>, vector<16x1xf32>
    tpu.vector_store %arg10[%c0_26, %c0_27], %36 {strides = array<i32>} : memref<16x1xf32, #tpu.memory_space<vmem>>, vector<16x1xf32>,
    %c0_i32_28 = arith.constant 0 : i32
    %38 = arith.cmpi eq, %arg1, %c0_i32_28 : i32
    %39 = arith.extui %38 : i1 to i32
    %c0_i32_29 = arith.constant 0 : i32
    %40 = arith.cmpi ne, %39, %c0_i32_29 : i32
    scf.if %40 {
      %c0_30 = arith.constant 0 : index
      %c0_31 = arith.constant 0 : index
      %41 = vector.load %arg7[%c0_30, %c0_31] : memref<16x1xf32, #tpu.memory_space<vmem>>, vector<16x1xf32>
      %c0_32 = arith.constant 0 : index
      %c0_33 = arith.constant 0 : index
      %42 = vector.load %arg8[%c0_32, %c0_33] : memref<16x1xf32, #tpu.memory_space<vmem>>, vector<16x1xf32>
      %43 = math.log %42 : vector<16x1xf32>
      %44 = arith.addf %41, %43 : vector<16x1xf32>
      %c0_34 = arith.constant 0 : index
      %c0_35 = arith.constant 0 : index
      %45 = vector.load %arg9[%c0_34, %c0_35] : memref<16x1xf32, #tpu.memory_space<vmem>>, vector<16x1xf32>
      %c0_36 = arith.constant 0 : index
      %c0_37 = arith.constant 0 : index
      %46 = vector.load %arg10[%c0_36, %c0_37] : memref<16x1xf32, #tpu.memory_space<vmem>>, vector<16x1xf32>
      %47 = arith.mulf %44, %46 : vector<16x1xf32>
      %48 = arith.subf %45, %47 : vector<16x1xf32>
      %49 = vector.shape_cast %48 : vector<16x1xf32> to vector<16x1xf32>
      %50 = vector.broadcast %49 : vector<16x1xf32> to vector<16x128xf32>
      %c0_38 = arith.constant 0 : index
      %c0_39 = arith.constant 0 : index
      %51 = vector.load %arg6[%c0_38, %c0_39] : memref<16x128xf32, #tpu.memory_space<vmem>>, vector<16x128xf32>
      tpu.vector_store %arg6[%c0_38, %c0_39], %50 {strides = array<i32>} : memref<16x128xf32, #tpu.memory_space<vmem>>, vector<16x128xf32>,
    } else {
    }
    return
  }
  func.func @transform_0(%arg0: i32, %arg1: i32) -> (i32, i32) {
    %c0_i32 = arith.constant 0 : i32
    %c0_i32_0 = arith.constant 0 : i32
    return %arg0, %c0_i32 : i32, i32
  }
  func.func @transform_1(%arg0: i32, %arg1: i32) -> (i32, i32) {
    %c0_i32 = arith.constant 0 : i32
    %c0_i32_0 = arith.constant 0 : i32
    return %c0_i32, %arg1 : i32, i32
  }
  func.func @transform_2(%arg0: i32, %arg1: i32) -> (i32, i32) {
    %c0_i32 = arith.constant 0 : i32
    %c0_i32_0 = arith.constant 0 : i32
    return %c0_i32, %arg1 : i32, i32
  }
  func.func @transform_3(%arg0: i32, %arg1: i32) -> (i32, i32) {
    %c0_i32 = arith.constant 0 : i32
    return %arg0, %arg1 : i32, i32
  }
  func.func @transform_4(%arg0: i32, %arg1: i32) -> (i32, i32) {
    %c0_i32 = arith.constant 0 : i32
    %c0_i32_0 = arith.constant 0 : i32
    return %arg0, %c0_i32 : i32, i32
  }
}

</mosaic_0001>

<bundles_post_ra>
// kernel: _decoder_forward_impl.1
= control target key start
LH: loop header
LB: loop body
LE: loop exit
PB: predicated region body
PF: predicated region fallthrough
CT: control target
= control target key end

     0   :  { %v415_v1 = vmov 0   ;;  %vm108_vm0 = vcmask 261120   ;;  %vm22_vm1 = vcmask 7168   ;;  %v416_v10 = vmov -inf   ;;  %s571_s1 = inlined_call_operand.vmem [shape: bf16[32,512], index: 1, kind: input, shape index: {}]   ;;  %s572_s0 = inlined_call_operand.vmem [shape: bf16[16,32], index: 0, kind: input, shape index: {}]   ;;  %s573_s2 = inlined_call_operand.vmem [shape: f32[1,512], index: 2, kind: input, shape index: {}]   ;;  %s574_s3 = inlined_call_operand.vmem [shape: bf16[16,512], index: 3, kind: input, shape index: {}]   ;;  %s575_s4 = inlined_call_operand.vmem [shape: f32[16,128], index: 4, kind: output, shape index: {}]  }
   0x1   :  { %v378_v0 = vld [vmem:[%s571_s1 + $0x4] ss:$16 sps:$4 sm:$0xff]   ;;  %144 = vmatprep.mubr.bf16.mxu0 %v415_v1  ;;  %187 = vmatprep.mubr.bf16.mxu1 %v415_v1  ;;  %v380_v2 = vld [vmem:[%s571_s1 + $0xc] ss:$16 sps:$4 sm:$0xff]   ;;  %v382_v3 = vld [vmem:[%s571_s1] ss:$16 sps:$4 sm:$0xff]   ;;  %v43_v11 = vlaneseq }
   0x2   :  { %376 = vset.pattern.permute.xlu1 %v415_v1  ;;  %377 = vset.pattern.permute.xlu0 %v415_v1  ;;  %v383_v4 = vld [vmem:[%s571_s1 + $0x8] ss:$16 sps:$4 sm:$0xff]   ;;  %v384_v5 = vld [vmem:[%s571_s1 + $0x24] ss:$16 sps:$4 sm:$0xff]   ;;  %v386_v6 = vld [vmem:[%s571_s1 + $0x2c] ss:$16 sps:$4 sm:$0xff]  }
   0x3   :  { %112 = vmatprep.subr.bf16.mxu0 %v378_v0  ;;  %155 = vmatprep.subr.bf16.mxu1 %v380_v2  ;;  %v388_v7 = vld [vmem:[%s571_s1 + $0x20] ss:$16 sps:$4 sm:$0xff]   ;;  %v389_v8 = vld [vmem:[%s571_s1 + $0x28] ss:$16 sps:$4 sm:$0xff]   ;;  %23 = vst.msk [vmem:[#allocation2] sm:$0xff] %vm22_vm1, %v416_v10  ;;  %24 = vst.msk [vmem:[#allocation2 + $0x8] sm:$0xff] %vm22_vm1, %v416_v10 }
   0x4   :  { %113 = vmatpush1.bf16.msra.mxu0 %v382_v3  ;;  %156 = vmatpush1.bf16.msra.mxu1 %v383_v4  ;;  %v390_v9 = vld [vmem:[%s572_s0] sm:$0xff]   ;;  %v44_v12 = vshrl.u32 %v43_v11, 7  ;;  %v417_v44 = vmov 0.0   ;;  %v200_v10 = vld [vmem:[%s574_s3 + $0x10] sm:$0xff]  ;;  %v199_v11 = vld [vmem:[%s574_s3 + $0x8] sm:$0xff] }
   0x5   :  { %114 = vmatprep.subr.bf16.mxu0 %v384_v5  ;;  %157 = vmatprep.subr.bf16.mxu1 %v386_v6  ;;  %v41_v15 = vld [vmem:[%s573_s2] sm:$0xf]  ;;  %25 = vst.msk [vmem:[#allocation3] sm:$0xff] %vm22_vm1, %v417_v44  ;;  %26 = vst.msk [vmem:[#allocation3 + $0x8] sm:$0xff] %vm22_vm1, %v417_v44 }
   0x6   :  { %v45_v13 = vsub.s32 0, %v44_v12  ;;  %v53_v14 = vsub.s32 2, %v44_v12  ;;  %v49_v16 = vsub.s32 1, %v44_v12  ;;  %v57_v17 = vsub.s32 3, %v44_v12  ;;  %27 = vst.msk [vmem:[#allocation4] sm:$0xff] %vm22_vm1, %v417_v44  ;;  %28 = vst.msk [vmem:[#allocation4 + $0x8] sm:$0xff] %vm22_vm1, %v417_v44 }
   0x7   :  { %29 = vst.msk [vmem:[#allocation5] sm:$0xff] %vm22_vm1, %v417_v44  ;;  %30 = vst.msk [vmem:[#allocation5 + $0x8] sm:$0xff] %vm22_vm1, %v417_v44  ;;  %v198_v6 = vld [vmem:[%s574_s3] sm:$0xff] }
   0x8   :  { %115 = vmatpush1.bf16.msra.mxu0 %v388_v7  ;;  %158 = vmatpush1.bf16.msra.mxu1 %v389_v8  ;;  %v46_v18 = vrot.slane %v41_v15, %v45_v13  ;;  %v54_v19 = vrot.slane %v41_v15, %v53_v14  ;;  %v50_v20 = vrot.slane %v41_v15, %v49_v16  ;;  %v202_v8 = vunpack.c.l.bf16 %v198_v6 }
   0x9   :  { %v58_v21 = vrot.slane %v41_v15, %v57_v17  ;;  %v206_v16 = vunpack.c.l.bf16 %v200_v10  ;;  %v207_v17 = vunpack.c.h.bf16 %v200_v10 }
   0xa   :  { %v505_v45 = vld [vmem:[#allocation2] sm:$0xff]  ;;  %v510_v48 = vld [vmem:[#allocation2 + $0x8] sm:$0xff] }
   0xb   :  { %371 = vmatmul.mubr.msk.bf16.vlgmr.msra.gmra.mrb[0].mxu0 %vm108_vm0, %v390_v9  ;;  %372 = vmatmul.mubr.msk.bf16.vlgmr.msra.gmra.mrb[0].mxu1 %vm108_vm0, %v390_v9  ;;  %v203_v9 = vunpack.c.h.bf16 %v198_v6 }
   0xd   :  { %v311_v13 = vadd.f32 %v203_v9, %v202_v8 }
  0xde   :  { %v146_v22 = vpop.f32.mrb[0].mxu0  ;;  %v189_v23 = vpop.f32.mrb[0].mxu1 }
  0xdf   :  { %v475_v24 = vadd.f32 %v146_v22, %v46_v18  ;;  %v477_v25 = vadd.f32 %v189_v23, %v54_v19  ;;  %v148_v26 = vpop.f32.mrb[1].mxu0  ;;  %v191_v27 = vpop.f32.mrb[1].mxu1 }
  0xe0   :  { %v479_v28 = vadd.f32 %v148_v26, %v50_v20  ;;  %v481_v29 = vadd.f32 %v191_v27, %v58_v21  ;;  %v150_v30 = vpop.f32.mrb[2].mxu0  ;;  %v193_v31 = vpop.f32.mrb[2].mxu1  ;;  %v316_v27 = vadd.f32 %v207_v17, %v206_v16 }
  0xe1   :  { %v483_v32 = vadd.f32 %v150_v30, %v46_v18  ;;  %v485_v33 = vadd.f32 %v193_v31, %v54_v19  ;;  %v152_v34 = vpop.f32.mrb[3].mxu0  ;;  %v195_v35 = vpop.f32.mrb[3].mxu1  ;;  %v212_v36 = vmax.f32 %v475_v24, %v477_v25  ;;  %v204_v19 = vunpack.c.l.bf16 %v199_v11 }
  0xe2   :  { %v489_v37 = vadd.f32 %v152_v34, %v50_v20  ;;  %v491_v38 = vadd.f32 %v195_v35, %v58_v21  ;;  %v213_v39 = vmax.f32 %v479_v28, %v481_v29  ;;  %v201_v20 = vld [vmem:[%s574_s3 + $0x18] sm:$0xff]  ;;  %v205_v31 = vunpack.c.h.bf16 %v199_v11  ;;  %v286_v11 = vld [vmem:[#allocation4 + $0x8] sm:$0xff] }
  0xe3   :  { %v217_v41 = vmax.f32 %v483_v32, %v485_v33  ;;  %v312_v26 = vadd.f32 %v311_v13, %v204_v19  ;;  %v208_v34 = vunpack.c.l.bf16 %v201_v20  ;;  %v287_v35 = vmul.f32 %v202_v8, %v475_v24 }
  0xe4   :  { %v214_v40 = vmax.f32 %v212_v36, %v213_v39  ;;  %v218_v42 = vmax.f32 %v489_v37, %v491_v38  ;;  %v288_v36 = vmul.f32 %v203_v9, %v479_v28 }
  0xe5   :  { %v317_v44 = vadd.f32 %v316_v27, %v208_v34 }
  0xe6   :  { %215 = vmax.xlane.f32.xlu0 %v214_v40  ;;  %v219_v43 = vmax.f32 %v217_v41, %v218_v42  ;;  %v313_v42 = vadd.f32 %v312_v26, %v205_v31 }
  0xea   :  { %220 = vmax.xlane.f32.xlu0 %v219_v43 }
 0x173   :  { %v216_v46 = vpop.xlane.xlu0 %215 }
 0x174   :  { %v508_v47 = vmax.f32 %v505_v45, %v216_v46 }
 0x176   :  { %v224_v49 = vsub.f32 %v505_v45, %v508_v47  ;;  %283 = vst.msk [vmem:[#allocation2] sm:$0xff] %vm22_vm1, %v508_v47  ;;  %236 = vperm.xlu1 %376, %v508_v47  }
 0x177   :  { %v221_v50 = vpop.xlane.xlu0 %220 }
 0x178   :  { %v518_v51 = vmax.f32 %v510_v48, %v221_v50  ;;  %v209_v50 = vunpack.c.h.bf16 %v201_v20 }
 0x17a   :  { %v225_v52 = vsub.f32 %v510_v48, %v518_v51  ;;  %284 = vst.msk [vmem:[#allocation2 + $0x8] sm:$0xff] %vm22_vm1, %v518_v51  ;;  %241 = vperm.xlu1 %376, %v518_v51  }
 0x181   :  { %v329_v26 = vld [vmem:[#allocation2 + $0x8] sm:$0xff] }
 0x1f5   :  { %v237_v53 = vpop.permute.xlu1 %236 }
 0x1f6   :  { %v244_v54 = vsub.f32 %v475_v24, %v237_v53  ;;  %v245_v55 = vsub.f32 %v479_v28, %v237_v53  ;;  %v246_v56 = vsub.f32 %v477_v25, %v237_v53  ;;  %v247_v57 = vsub.f32 %v481_v29, %v237_v53 }
 0x1f7   :  { %v291_v53 = vmul.f32 %v206_v16, %v483_v32  ;;  %v318_v24 = vadd.f32 %v317_v44, %v209_v50  ;;  %v289_v28 = vmul.f32 %v204_v19, %v477_v25  ;;  %v228_v25 = vmul.f32 1.442695, %v225_v52  ;;  %v285_v52 = vld [vmem:[#allocation4] sm:$0xff] }
 0x1f8   :  { %v252_v58 = vmul.f32 1.442695, %v244_v54  ;;  %v254_v59 = vmul.f32 1.442695, %v245_v55  ;;  %v256_v60 = vmul.f32 1.442695, %v246_v56  ;;  %v292_v54 = vmul.f32 %v207_v17, %v489_v37 }
 0x1f9   :  { %v258_v61 = vmul.f32 1.442695, %v247_v57  ;;  %v242_v62 = vpop.permute.xlu1 %241  ;;  %v295_v56 = vadd.f32 %v288_v36, %v287_v35  ;;  %v328_v17 = vld [vmem:[#allocation2] sm:$0xff] }
 0x1fa   :  { %391 = vpow2.f32 %v252_v58  ;;  %v248_v63 = vsub.f32 %v483_v32, %v242_v62  ;;  %v249_v0 = vsub.f32 %v489_v37, %v242_v62  ;;  %v250_v1 = vsub.f32 %v485_v33, %v242_v62 }
 0x1fb   :  { %393 = vpow2.f32 %v254_v59  ;;  %v251_v2 = vsub.f32 %v491_v38, %v242_v62  ;;  %v296_v57 = vadd.f32 %v295_v56, %v289_v28  ;;  %v300_v58 = vadd.f32 %v292_v54, %v291_v53 }
 0x1fc   :  { %395 = vpow2.f32 %v256_v60  ;;  %v260_v3 = vmul.f32 1.442695, %v248_v63  ;;  %v262_v4 = vmul.f32 1.442695, %v249_v0  ;;  %v264_v5 = vmul.f32 1.442695, %v250_v1 }
 0x1fd   :  { %397 = vpow2.f32 %v258_v61  ;;  %v266_v7 = vmul.f32 1.442695, %v251_v2  ;;  %v290_v59 = vmul.f32 %v205_v31, %v481_v29  ;;  %v293_v60 = vmul.f32 %v208_v34, %v485_v33  ;;  %v230_v0 = vld [vmem:[#allocation3] sm:$0xff] }
 0x1fe   :  { %399 = vpow2.f32 %v260_v3  ;;  %v294_v32 = vmul.f32 %v209_v50, %v491_v38  ;;  %v226_v63 = vmul.f32 1.442695, %v224_v49  ;;  %v231_v3 = vld [vmem:[#allocation3 + $0x8] sm:$0xff]  ;;  %v309_v38 = vld [vmem:[#allocation5] sm:$0xff] }
 0x1ff   :  { %401 = vpow2.f32 %v262_v4  ;;  %v297_v61 = vadd.f32 %v296_v57, %v290_v59  ;;  %v301_v62 = vadd.f32 %v300_v58, %v293_v60 }
 0x200   :  { %403 = vpow2.f32 %v264_v5 }
 0x201   :  { %405 = vpow2.f32 %v266_v7  ;;  %v302_v37 = vadd.f32 %v301_v62, %v294_v32  ;;  %v310_v7 = vld [vmem:[#allocation5 + $0x8] sm:$0xff] }
 0x202   :  { %407 = vpow2.f32 %v226_v63 }
 0x203   :  { %409 = vpow2.f32 %v228_v25 }
 0x204   :  { %v392_v12 = vpop.eup %391 }
 0x205   :  { %v394_v14 = vpop.eup %393 }
 0x206   :  { %v396_v15 = vpop.eup %395  ;;  %v268_v18 = vadd.f32 %v394_v14, %v392_v12 }
 0x207   :  { %v398_v21 = vpop.eup %397 }
 0x208   :  { %v400_v22 = vpop.eup %399  ;;  %v269_v23 = vadd.f32 %v396_v15, %v268_v18 }
 0x209   :  { %v402_v30 = vpop.eup %401 }
 0x20a   :  { %v270_v39 = vadd.f32 %v398_v21, %v269_v23  ;;  %v273_v40 = vadd.f32 %v402_v30, %v400_v22  ;;  %v404_v41 = vpop.eup %403 }
 0x20b   :  { %v406_v46 = vpop.eup %405 }
 0x20c   :  { %271 = vadd.xlane.f32.xlu0 %v270_v39  ;;  %v274_v43 = vadd.f32 %v404_v41, %v273_v40  ;;  %v408_v29 = vpop.eup %407 }
 0x20d   :  { %v232_v33 = vmul.f32 %v408_v29, %v230_v0  ;;  %v410_v1 = vpop.eup %409 }
 0x20e   :  { %v275_v55 = vadd.f32 %v406_v46, %v274_v43  ;;  %v233_v5 = vmul.f32 %v410_v1, %v231_v3 }
 0x210   :  { %314 = vadd.xlane.f32.xlu0 %v313_v42  ;;  %276 = vadd.xlane.f32.xlu1 %v275_v55 }
 0x214   :  { %319 = vadd.xlane.f32.xlu0 %v318_v24 }
 0x218   :  { %298 = vadd.xlane.f32.xlu0 %v297_v61 }
 0x21c   :  { %303 = vadd.xlane.f32.xlu0 %v302_v37 }
 0x299   :  { %v272_v2 = vpop.xlane.xlu0 %271 }
 0x29a   :  { %v278_v4 = vadd.f32 %v272_v2, %v232_v33 }
 0x29c   :  { %281 = vst.msk [vmem:[#allocation3] sm:$0xff] %vm22_vm1, %v278_v4 }
 0x29d   :  { %v277_v6 = vpop.xlane.xlu1 %276  ;;  %v315_v45 = vpop.xlane.xlu0 %314 }
 0x29e   :  { %v279_v47 = vadd.f32 %v277_v6, %v233_v5  ;;  %v321_v49 = vadd.f32 %v315_v45, %v309_v38 }
 0x2a0   :  { %282 = vst.msk [vmem:[#allocation3 + $0x8] sm:$0xff] %vm22_vm1, %v279_v47  ;;  %323 = vst.msk [vmem:[#allocation5] sm:$0xff] %vm22_vm1, %v321_v49 }
 0x2a1   :  { %v320_v48 = vpop.xlane.xlu0 %319 }
 0x2a2   :  { %v322_v51 = vadd.f32 %v320_v48, %v310_v7 }
 0x2a3   :  { %v330_v8 = vld [vmem:[#allocation3] sm:$0xff] }
 0x2a4   :  { %324 = vst.msk [vmem:[#allocation5 + $0x8] sm:$0xff] %vm22_vm1, %v322_v51  ;;  %411 = vlog2.f32 %v330_v8 }
 0x2a5   :  { %v299_v9 = vpop.xlane.xlu0 %298 }
 0x2a6   :  { %v305_v10 = vadd.f32 %v299_v9, %v285_v52 }
 0x2a7   :  { %v331_v12 = vld [vmem:[#allocation3 + $0x8] sm:$0xff]  ;;  %v340_v20 = vld [vmem:[#allocation5] sm:$0xff] }
 0x2a8   :  { %307 = vst.msk [vmem:[#allocation4] sm:$0xff] %vm22_vm1, %v305_v10  ;;  %413 = vlog2.f32 %v331_v12 }
 0x2a9   :  { %v304_v13 = vpop.xlane.xlu0 %303 }
 0x2aa   :  { %v306_v14 = vadd.f32 %v304_v13, %v286_v11 }
 0x2ab   :  { %v341_v31 = vld [vmem:[#allocation5 + $0x8] sm:$0xff] }
 0x2ac   :  { %308 = vst.msk [vmem:[#allocation4 + $0x8] sm:$0xff] %vm22_vm1, %v306_v14 }
 0x2ae   :  { %v412_v15 = vpop.eup %411 }
 0x2af   :  { %v333_v16 = vmul.f32 0.6931472, %v412_v15  ;;  %v338_v23 = vld [vmem:[#allocation4] sm:$0xff] }
 0x2b1   :  { %v336_v18 = vadd.f32 %v333_v16, %v328_v17 }
 0x2b2   :  { %v414_v19 = vpop.eup %413 }
 0x2b3   :  { %v342_v21 = vmul.f32 %v340_v20, %v336_v18  ;;  %v335_v22 = vmul.f32 0.6931472, %v414_v19  ;;  %v339_v35 = vld [vmem:[#allocation4 + $0x8] sm:$0xff] }
 0x2b5   :  { %v344_v27 = vsub.f32 %v338_v23, %v342_v21  ;;  %v337_v30 = vadd.f32 %v335_v22, %v329_v26 }
 0x2b7   :  { %348 = vperm.xlu0 %377, %v344_v27   ;;  %v343_v34 = vmul.f32 %v341_v31, %v337_v30 }
 0x2b9   :  { %v345_v36 = vsub.f32 %v339_v35, %v343_v34 }
 0x2bb   :  { %353 = vperm.xlu1 %376, %v345_v36  }
 0x336   :  { %v349_v39 = vpop.permute.xlu0 %348 }
 0x337   :  { %356 = vst [vmem:[%s575_s4] sm:$0xff] %v349_v39 }
 0x33a   :  { %v354_v40 = vpop.permute.xlu1 %353 }
 0x33b   :  { %357 = vst [vmem:[%s575_s4 + $0x8] sm:$0xff] %v354_v40 }

</bundles_post_ra>
